<compile_context>
chip_gen: v6e
topology: v6e:2x2x1
jax: 0.10.0
libtpu: 0.0.40
codegen_flags: <defaults>
</compile_context>

<pallas_src>
import math

import jax
import jax.numpy as jnp
from jax.experimental import pallas as pl
from jax.experimental.pallas import tpu as pltpu


_INV_SQRT2 = 0.7071067811865476


def _gelu_exact(x):
    # Matches torch.nn.GELU() default (erf-based, not tanh approximation).
    return 0.5 * x * (1.0 + jax.lax.erf(x * _INV_SQRT2))


def mlp_mixer_kernel(x_ref, w1_ref, b1_ref, w2_ref, b2_ref, o_ref):
    """Fused token-mixing MLP on one (batch, C-tile) block.

    x_ref : (1, S, tc)  activations, compute dtype (bf16)
    w1_ref: (H, S)      fc1 weight, torch (out, in) layout, compute dtype
    b1_ref: (H, 1)      fc1 bias, f32
    w2_ref: (S, H)      fc2 weight, torch (out, in) layout, compute dtype
    b2_ref: (S, 1)      fc2 bias, f32
    o_ref : (1, S, tc)
    """
    x = x_ref[0]                                                    # (S, tc)
    # fc1: contraction on S, output (H, tc) -- lane dim is the C-tile.
    h = jnp.dot(w1_ref[...], x, preferred_element_type=jnp.float32)
    h = _gelu_exact(h + b1_ref[...])                                # f32 math
    h = h.astype(w2_ref.dtype)                                      # bf16 for MXU
    # fc2: contraction on H, output (S, tc).
    o = jnp.dot(w2_ref[...], h, preferred_element_type=jnp.float32)
    o = o + b2_ref[...]
    o_ref[0] = o.astype(o_ref.dtype)


def _pick_c_tile(C, S, H, act_bytes, out_bytes, budget_bytes):
    """Largest 128-aligned C tile whose double-buffered in/out tiles plus the
    (double-buffered) resident weights fit `budget_bytes`."""
    if C <= 128:
        return C                      # full-dim block satisfies the lane rule
    weight_bytes = 2 * (H * S + S * H) * act_bytes + 2 * (H + S) * 4
    per_col = 2 * S * (act_bytes + out_bytes)   # 2 bufs x (in + out) per column
    tc = (max(budget_bytes - weight_bytes, 0) // per_col // 128) * 128
    return int(max(128, min(tc, 1024)))


def mlp_mixer_forward(x, w1, b1, w2, b2, *, tc=None,
                      compute_dtype=jnp.bfloat16):
    """x: (B, S, C).  w1: (H, S), b1: (H,), w2: (S, H), b2: (S,) in native
    torch nn.Linear (out_features, in_features) layout.  Returns (B, S, C)."""
    B, S, C = x.shape
    H, s_in = w1.shape
    assert s_in == S and w2.shape == (S, H)
    out_dtype = x.dtype

    act_bytes = jnp.dtype(compute_dtype).itemsize
    out_bytes = jnp.dtype(out_dtype).itemsize
    if tc is None:
        tc = _pick_c_tile(C, S, H, act_bytes, out_bytes,
                          budget_bytes=24 * 1024 * 1024)

    # Ragged C: pad to a tile multiple instead of asserting divisibility.
    n_ct = pl.cdiv(C, tc)
    Cp = n_ct * tc
    xc = x.astype(compute_dtype)
    if Cp != C:
        xc = jnp.pad(xc, ((0, 0), (0, 0), (0, Cp - C)))

    w1c = w1.astype(compute_dtype)
    w2c = w2.astype(compute_dtype)
    b1c = b1.astype(jnp.float32).reshape(H, 1)
    b2c = b2.astype(jnp.float32).reshape(S, 1)

    # Explicit VMEM budget (2x headroom for compiler-internal scratch), capped
    # at 48 MiB so it stays inside v7x's 64 MiB physical VMEM.
    # Weights/biases are budgeted double-buffered even though their index_map
    # is constant; on VMEM-tight configs (large S*H on v7x) they could be
    # single-buffered via BlockSpec(pipeline_mode=pl.Buffered(1)) or the S/H
    # contraction K-tiled with an accumulator scratch.
    est = (2 * S * tc * (act_bytes + out_bytes)
           + 2 * (H * S + S * H) * act_bytes + 2 * (H + S) * 4)
    vmem_limit = int(min(max(2 * est, 32 * 1024 * 1024), 48 * 1024 * 1024))

    out = pl.pallas_call(
        mlp_mixer_kernel,
        out_shape=jax.ShapeDtypeStruct((B, S, Cp), out_dtype),
        grid_spec=pltpu.PrefetchScalarGridSpec(
            num_scalar_prefetch=0,
            grid=(B, n_ct),
            in_specs=[
                pl.BlockSpec((1, S, tc), lambda b, c: (b, 0, c)),  # activations
                pl.BlockSpec((H, S), lambda b, c: (0, 0)),         # fc1 weight
                pl.BlockSpec((H, 1), lambda b, c: (0, 0)),         # fc1 bias
                pl.BlockSpec((S, H), lambda b, c: (0, 0)),         # fc2 weight
                pl.BlockSpec((S, 1), lambda b, c: (0, 0)),         # fc2 bias
            ],
            out_specs=pl.BlockSpec((1, S, tc), lambda b, c: (b, 0, c)),
        ),
        compiler_params=pltpu.CompilerParams(
            dimension_semantics=("parallel", "parallel"),
            vmem_limit_bytes=vmem_limit),
    )(xc, w1c, b1c, w2c, b2c)

    if Cp != C:
        out = out[:, :, :C]
    return out


def _reference(x, w1, b1, w2, b2, compute_dtype=jnp.float32):
    """Pure-JAX reference mirroring the PyTorch forward (optionally with the
    same bf16 cast points as the kernel)."""
    cd = compute_dtype
    xp = jnp.transpose(x, (0, 2, 1))                        # (B, C, S)
    h = jnp.einsum("bcs,hs->bch", xp.astype(cd), w1.astype(cd),
                   preferred_element_type=jnp.float32) + b1.astype(jnp.float32)
    h = _gelu_exact(h)
    o = jnp.einsum("bch,oh->bco", h.astype(cd), w2.astype(cd),
                   preferred_element_type=jnp.float32) + b2.astype(jnp.float32)
    return jnp.transpose(o, (0, 2, 1)).astype(x.dtype)


if __name__ == "__main__":
    # Small shapes implied by the module: batch=2, seq=8 (== seq_dim, the MLP
    # width; timm Mlp default hidden == in), channels=4.
    B, S, C = 2, 8, 4
    H = S
    key = jax.random.PRNGKey(0)
    kx, k1, k2, k3, k4 = jax.random.split(key, 5)

    x = jax.random.normal(kx, (B, S, C), jnp.float32)

    # Deterministic synthetic params in torch (out, in) layout, nn.Linear
    # default init ranges.
    bound = 1.0 / math.sqrt(S)
    w1 = jax.random.uniform(k1, (H, S), jnp.float32, -bound, bound)
    b1 = jax.random.uniform(k2, (H,), jnp.float32, -bound, bound)
    w2 = jax.random.uniform(k3, (S, H), jnp.float32, -bound, bound)
    b2 = jax.random.uniform(k4, (S,), jnp.float32, -bound, bound)

    y = mlp_mixer_forward(x, w1, b1, w2, b2)
    jax.block_until_ready(y)
    assert y.shape == (B, S, C)

    # Tight check against a reference with the same bf16 cast points.
    ref_bf16 = _reference(x, w1, b1, w2, b2, compute_dtype=jnp.bfloat16)
    assert jnp.allclose(y, ref_bf16, atol=1e-3, rtol=1e-3), \
        "mismatch vs bf16-matched JAX reference"
    # Loose check against the pure-f32 reference (bounds the bf16 cast error).
    ref_f32 = _reference(x, w1, b1, w2, b2, compute_dtype=jnp.float32)
    assert jnp.allclose(y, ref_f32, atol=5e-2, rtol=5e-2), \
        "mismatch vs f32 JAX reference"

    print("KERNEL_OK")
</pallas_src>

<mosaic_0001>
module attributes {stable_mosaic.version = 11 : i64} {
  func.func @mlp_mixer_kernel(%arg0: i32, %arg1: i32, %arg2: memref<1x8x4xbf16, #tpu.memory_space<vmem>>, %arg3: memref<8x8xbf16, #tpu.memory_space<vmem>>, %arg4: memref<8x1xf32, #tpu.memory_space<vmem>>, %arg5: memref<8x8xbf16, #tpu.memory_space<vmem>>, %arg6: memref<8x1xf32, #tpu.memory_space<vmem>>, %arg7: memref<1x8x4xf32, #tpu.memory_space<vmem>>) attributes {dimension_semantics = [#tpu.dimension_semantics<parallel>, #tpu.dimension_semantics<parallel>], iteration_bounds = array<i64: 2, 1>, scalar_prefetch = 0 : i64, scratch_operands = 0 : i64, tpu.core_type = #tpu.core_type<tc>, window_params = [{transform_indices = @transform_0, window_bounds = array<i64: 1, 8, 4>}, {pipeline_mode = #tpu.pipeline_mode<synchronous>, transform_indices = @transform_1, window_bounds = array<i64: 8, 8>}, {pipeline_mode = #tpu.pipeline_mode<synchronous>, transform_indices = @transform_2, window_bounds = array<i64: 8, 1>}, {pipeline_mode = #tpu.pipeline_mode<synchronous>, transform_indices = @transform_3, window_bounds = array<i64: 8, 8>}, {pipeline_mode = #tpu.pipeline_mode<synchronous>, transform_indices = @transform_4, window_bounds = array<i64: 8, 1>}, {transform_indices = @transform_5, window_bounds = array<i64: 1, 8, 4>}]} {
    %c0 = arith.constant 0 : index
    %c0_0 = arith.constant 0 : index
    %c0_1 = arith.constant 0 : index
    %0 = vector.load %arg2[%c0, %c0_0, %c0_1] : memref<1x8x4xbf16, #tpu.memory_space<vmem>>, vector<1x8x4xbf16>
    %1 = vector.shape_cast %0 : vector<1x8x4xbf16> to vector<8x4xbf16>
    %c0_2 = arith.constant 0 : index
    %c0_3 = arith.constant 0 : index
    %2 = vector.load %arg3[%c0_2, %c0_3] : memref<8x8xbf16, #tpu.memory_space<vmem>>, vector<8x8xbf16>
    %cst = arith.constant dense<0.000000e+00> : vector<8x4xf32>
    %3 = tpu.matmul %2, %1, %cst {dimension_numbers = #tpu.dot_dimension_numbers<[1], [0], [0], [1], [0, 0, 1, 1], [], []>} : vector<8x8xbf16>, vector<8x4xbf16>, vector<8x4xf32> -> vector<8x4xf32>
    %c0_4 = arith.constant 0 : index
    %c0_5 = arith.constant 0 : index
    %4 = vector.load %arg4[%c0_4, %c0_5] : memref<8x1xf32, #tpu.memory_space<vmem>>, vector<8x1xf32>
    %5 = vector.broadcast %4 : vector<8x1xf32> to vector<8x4xf32>
    %6 = arith.addf %3, %5 : vector<8x4xf32>
    %cst_6 = arith.constant 5.000000e-01 : f32
    %7 = vector.broadcast %cst_6 : f32 to vector<8x4xf32>
    %8 = arith.mulf %7, %6 : vector<8x4xf32>
    %cst_7 = arith.constant 0.707106769 : f32
    %9 = vector.broadcast %cst_7 : f32 to vector<8x4xf32>
    %10 = arith.mulf %6, %9 : vector<8x4xf32>
    %11 = math.erf %10 : vector<8x4xf32>
    %cst_8 = arith.constant 1.000000e+00 : f32
    %12 = vector.broadcast %cst_8 : f32 to vector<8x4xf32>
    %13 = arith.addf %12, %11 : vector<8x4xf32>
    %14 = arith.mulf %8, %13 : vector<8x4xf32>
    %15 = arith.truncf %14 : vector<8x4xf32> to vector<8x4xbf16>
    %c0_9 = arith.constant 0 : index
    %c0_10 = arith.constant 0 : index
    %16 = vector.load %arg5[%c0_9, %c0_10] : memref<8x8xbf16, #tpu.memory_space<vmem>>, vector<8x8xbf16>
    %cst_11 = arith.constant dense<0.000000e+00> : vector<8x4xf32>
    %17 = tpu.matmul %16, %15, %cst_11 {dimension_numbers = #tpu.dot_dimension_numbers<[1], [0], [0], [1], [0, 0, 1, 1], [], []>} : vector<8x8xbf16>, vector<8x4xbf16>, vector<8x4xf32> -> vector<8x4xf32>
    %c0_12 = arith.constant 0 : index
    %c0_13 = arith.constant 0 : index
    %18 = vector.load %arg6[%c0_12, %c0_13] : memref<8x1xf32, #tpu.memory_space<vmem>>, vector<8x1xf32>
    %19 = vector.broadcast %18 : vector<8x1xf32> to vector<8x4xf32>
    %20 = arith.addf %17, %19 : vector<8x4xf32>
    %c0_14 = arith.constant 0 : index
    %c0_15 = arith.constant 0 : index
    %c0_16 = arith.constant 0 : index
    %21 = vector.load %arg7[%c0_14, %c0_15, %c0_16] : memref<1x8x4xf32, #tpu.memory_space<vmem>>, vector<1x8x4xf32>
    %22 = vector.shape_cast %21 : vector<1x8x4xf32> to vector<8x4xf32>
    %23 = vector.shape_cast %20 : vector<8x4xf32> to vector<1x8x4xf32>
    tpu.vector_store %arg7[%c0_14, %c0_15, %c0_16], %23 {strides = array<i32>} : memref<1x8x4xf32, #tpu.memory_space<vmem>>, vector<1x8x4xf32>,
    return
  }
  func.func @transform_0(%arg0: i32, %arg1: i32) -> (i32, i32, i32) {
    %c0_i32 = arith.constant 0 : i32
    %c0_i32_0 = arith.constant 0 : i32
    return %arg0, %c0_i32, %arg1 : i32, i32, i32
  }
  func.func @transform_1(%arg0: i32, %arg1: i32) -> (i32, i32) {
    %c0_i32 = arith.constant 0 : i32
    %c0_i32_0 = arith.constant 0 : i32
    %c0_i32_1 = arith.constant 0 : i32
    return %c0_i32, %c0_i32_0 : i32, i32
  }
  func.func @transform_2(%arg0: i32, %arg1: i32) -> (i32, i32) {
    %c0_i32 = arith.constant 0 : i32
    %c0_i32_0 = arith.constant 0 : i32
    %c0_i32_1 = arith.constant 0 : i32
    return %c0_i32, %c0_i32_0 : i32, i32
  }
  func.func @transform_3(%arg0: i32, %arg1: i32) -> (i32, i32) {
    %c0_i32 = arith.constant 0 : i32
    %c0_i32_0 = arith.constant 0 : i32
    %c0_i32_1 = arith.constant 0 : i32
    return %c0_i32, %c0_i32_0 : i32, i32
  }
  func.func @transform_4(%arg0: i32, %arg1: i32) -> (i32, i32) {
    %c0_i32 = arith.constant 0 : i32
    %c0_i32_0 = arith.constant 0 : i32
    %c0_i32_1 = arith.constant 0 : i32
    return %c0_i32, %c0_i32_0 : i32, i32
  }
  func.func @transform_5(%arg0: i32, %arg1: i32) -> (i32, i32, i32) {
    %c0_i32 = arith.constant 0 : i32
    %c0_i32_0 = arith.constant 0 : i32
    return %arg0, %c0_i32, %arg1 : i32, i32, i32
  }
}

</mosaic_0001>

<bundles_post_ra>
// kernel: tpu_custom_call.1
= control target key start
LH: loop header
LB: loop body
LE: loop exit
PB: predicated region body
PF: predicated region fallthrough
CT: control target
= control target key end

     0   :  { %s557_s18 = smov 0   ;;  %s559_s19 = smov 0   ;;  %s610_s0 = inlined_call_operand.vmem [shape: bf16[2,8,4], index: 0, kind: input, shape index: {}]   ;;  %s611_s1 = inlined_call_operand.vmem [shape: bf16[8,8], index: 1, kind: input, shape index: {}]   ;;  %s612_s2 = inlined_call_operand.vmem [shape: f32[8,1], index: 2, kind: input, shape index: {}]   ;;  %s613_s3 = inlined_call_operand.vmem [shape: bf16[8,8], index: 3, kind: input, shape index: {}]   ;;  %s614_s4 = inlined_call_operand.vmem [shape: f32[8,1], index: 4, kind: input, shape index: {}]   ;;  %s615_s5 = inlined_call_operand.vmem [shape: f32[2,8,4], index: 5, kind: output, shape index: {}]  }
   0x1   :  { %s561_s20 = smov 0  }
   0x2 LB: > { %s27_s21 = sadd.s32 1, %s518_s19  ;;  %p447_p0 = scmp.ge.s32.totalorder %s522_s20, 1  ;;  %s522_s20 = sphi %s561_s20, %s15_s20   ;;  %s518_s19 = sphi %s559_s19, %s617_s19   ;;  %s514_s18 = sphi %s557_s18, %s616_s18  }
   0x3   : > { %p29_p1 = scmp.ge.s32.totalorder %s27_s21, 2  ;;  %p205_p2 = scmp.lt.s32.totalorder %s522_s20, 3 }
   0x5   : > { %s619_s21 = smov (%p29_p1, %s27_s21), 0  ;;  %p206_p3 = pnand %p447_p0, %p205_p2 }
   0x6   : > { %p237_p4 = scmp.lt.s32.totalorder (!%p206_p3), %s514_s18, 1 }
   0x7   : > { %209 = sbr.rel (%p206_p3) target bundleno = 440 (0x1b8), region = 40 }
   0xc   : > { %v524_v0 = vmov 0.0   ;;  %vm525_vm0 = vmmov 0   ;;  %v254_v1 = vld [vmem:[%s612_s2] sm:$0xff]  ;;  %s621_s18 = smov (!%p237_p4, %s514_s18), 1  ;;  %v526_v2 = vmov 0   ;;  %vm264_vm1 = vcmask 1043456  }
   0xd   : > { %458 = vmatprep.subr.bf16.mxu0 %v524_v0  ;;  %460 = vmatprep.mubr.msk.bf16.mxu0 %vm525_vm0, %v524_v0  ;;  %s448_s24 = sshll.u32 %s621_s18, 2  ;;  %v315_v3 = vld [vmem:[%s614_s4] sm:$0xff]  ;;  %vm260_vm2 = vcmask 64512   ;;  %s449_s9 = sshll.u32 %s621_s18, 3  ;;  %vm367_vm3 = vcmask 31744  }
   0xe   : > { %497 = vset.pattern.permute.xlu0 %v526_v2  ;;  %464 = vmatprep.subr.bf16.mxu1 %v524_v0  ;;  %s243_s29 = scalar_lea.vmem %s610_s0, %s448_s24  ;;  %v253_v6 = vld [vmem:[%s611_s1] sm:$0xf]  ;;  %s250_s12 = scalar_lea.vmem %s615_s5, %s449_s9 }
   0xf   : > { %257 = vperm.xlu0 %497, %v254_v1   ;;  %466 = vmatprep.mubr.msk.bf16.mxu1 %vm525_vm0, %v524_v0  ;;  %v252_v4 = vld [vmem:[%s243_s29] sm:$0xf] }
  0x10   : > { %v266_v5 = vsel %vm264_vm1, %v252_v4, 0  ;;  %v314_v20 = vld [vmem:[%s613_s3] sm:$0xf] }
  0x11   : > { %459 = vmatpush3.bf16.msra.mxu0 %v266_v5 }
  0x13   : > { %318 = vperm.xlu0 %497, %v315_v3  }
  0x14   : > { %461 = vmatmul.mubr.msk.bf16.vlgmr.msra.gmra.mxu0 %vm260_vm2, %v253_v6 }
  0x8a   : > { %v258_v7 = vpop.permute.xlu0 %257 }
  0x8e   : > { %v319_v21 = vpop.permute.xlu0 %318 }
  0xd4   : > { %v302_v8 = vpop.f32.mrf.mxu0 }
  0xd5   : > { %v303_v9 = vadd.f32 %v302_v8, %v258_v7 }
  0xd6   : > { %v462_v10 = vpop.f32.mrf.mxu0 }
  0xd7   : > { %v309_v11 = vmul.f32 0.70710677, %v303_v9  ;;  %v308_v15 = vmul.f32 0.5, %v303_v9 }
  0xd8   : > { %v305_v12 = vpop.f32.mrf.mxu0 }
  0xd9   : > { %498 = verf.f32 %v309_v11 }
  0xda   : > { %v463_v13 = vpop.f32.mrf.mxu0 }
  0xe6   : > { %v499_v14 = vpop.eup %498 }
  0xe7   : > { %v311_v16 = vadd.f32 1.0, %v499_v14 }
  0xe9   : > { %v312_v17 = vmul.f32 %v311_v16, %v308_v15 }
  0xeb   : > { %v313_v18 = vpack.c.bf16 %v312_v17, %v312_v17 }
  0xed   : > { %v325_v19 = vsel %vm264_vm1, %v313_v18, 0 }
  0xee   : > { %465 = vmatpush3.bf16.msra.mxu1 %v325_v19 }
  0xf1   : > { %467 = vmatmul.mubr.msk.bf16.vlgmr.msra.gmra.mxu1 %vm260_vm2, %v314_v20 }
 0x1b1   : > { %v361_v22 = vpop.f32.mrf.mxu1 }
 0x1b2   : > { %v362_v23 = vadd.f32 %v361_v22, %v319_v21 }
 0x1b3   : > { %v468_v24 = vpop.f32.mrf.mxu1 }
 0x1b4   : > { %368 = vst.msk [vmem:[%s250_s12] sm:$0xff] %vm367_vm3, %v362_v23 }
 0x1b5   : > { %v364_v25 = vpop.f32.mrf.mxu1 }
 0x1b7   : > { %v469_v26 = vpop.f32.mrf.mxu1 }
 0x1b8 PF: > { %s15_s20 = sadd.s32 1, %s522_s20   ;;  %s616_s18 = smov %s518_s19 }
 0x1b9   : > { %p12_p5 = scmp.ge.s32.totalorder %s15_s20, 4   ;;  %s617_s19 = smov %s619_s21 }
 0x1bb   :  { %14 = sbr.rel (!%p12_p5) target bundleno = 2 (0x2), region = 70 }

</bundles_post_ra>
